<compile_context>
chip_gen: v5e
topology: v5e:2x2
jax: 0.10.0
libtpu: 0.0.40
codegen_flags: <defaults>
</compile_context>

<pallas_src>
import functools

import jax
import jax.numpy as jnp
from jax import lax
from jax.experimental import pallas as pl
from jax.experimental.pallas import tpu as pltpu

REG_FOLD = 100.0   # self.reg_fold
EPS = 0.01         # self.eps buffer
LANES = 128        # vreg lane width
STRIP = 512        # points per inner strip (4 lane-tiles): bounds vreg live ranges
STRIP_ROWS = STRIP // LANES


def _recip(x):
    """1/x via EUP approx reciprocal + one Newton step (~f32 accuracy).

    NOTE: near-singular Jacobians (det -> 0) amplify the ~1e-6 relative error
    of this path; exact det == 0 on an in-domain point yields inf/NaN in the
    masked mean, matching the reference behavior."""
    r = pl.reciprocal(x, approx=True)
    return r * (2.0 - x * r)


def _frob2_compose(na, nb, nc, nd, da, db, dc, dd):
    """||J_num @ adj(J_den)||_F^2 for row-major 2x2 fields [a b; c d]."""
    m00 = na * dd - nb * dc
    m01 = nb * da - na * db
    m10 = nc * dd - nd * dc
    m11 = nd * da - nc * db
    return m00 * m00 + m01 * m01 + m10 * m10 + m11 * m11


# --------------------------------------------------------------------- kernel
def _collection_loss_kernel(mf_ref, mq_ref, jf_ref, jq_ref, jg_ref,
                            jmf_ref, jmq_ref, out_ref, *, n_points, block_pts):
    nstrips = block_pts // STRIP
    blk_base = pl.program_id(0) * block_pts
    lane_iota = lax.broadcasted_iota(jnp.int32, (1, STRIP), 1)

    def strip_body(s, carry):
        acc_s, acc_c = carry
        off = pl.multiple_of(s * STRIP, STRIP)

        def row(ref, r):
            # (1, STRIP) lane-slice of component row r; upcast so bf16 inputs
            # can be streamed straight from HBM.
            return ref[r:r + 1, pl.ds(off, STRIP)].astype(jnp.float32)

        # ---- validity mask: both uv's inside the unit disk AND the global
        # point index within the (ragged) array.  The index test is mandatory:
        # the tail block's out-of-range lanes contain unspecified VMEM.
        fx, fy = row(mf_ref, 0), row(mf_ref, 1)
        qx, qy = row(mq_ref, 0), row(mq_ref, 1)
        valid = ((fx * fx + fy * fy <= 1.0)
                 & (qx * qx + qy * qy <= 1.0)
                 & ((blk_base + off + lane_iota) < n_points))

        # ---- unpack 2x2 Jacobian fields (row-major [a b; c d])
        fa, fb, fc, fd = (row(jf_ref, r) for r in range(4))
        qa, qb, qc, qd = (row(jq_ref, r) for r in range(4))
        ga, gb, gc, gd = (row(jg_ref, r) for r in range(4))

        det_f = fa * fd - fb * fc
        det_q = qa * qd - qb * qc
        det_g = ga * gd - gb * gc
        inv_det_f = _recip(det_f)
        inv_det_q = _recip(det_q)
        inv_det_g = _recip(det_g)

        # cycle distortion through the hub G.
        #   A = J_num @ J_den^{-1} = (J_num @ adj(J_den)) * inv_det_den
        #   trace(A^T A) = ||J_num adj(J_den)||_F^2 * inv_det_den^2
        #   det(A^T A)   = (det_num / det_den)^2
        #   symDirichlet = trace + trace/det = trace * (1 + (det_den/det_num)^2)
        inv_det_g2 = inv_det_g * inv_det_g
        inv_det_f2 = inv_det_f * inv_det_f
        r_fg = det_g * inv_det_f            # F o G^-1
        r_qg = det_g * inv_det_q            # Q o G^-1
        r_qf = det_f * inv_det_q            # Q o F^-1
        ppd = (_frob2_compose(fa, fb, fc, fd, ga, gb, gc, gd)
               * inv_det_g2 * (1.0 + r_fg * r_fg)
               + _frob2_compose(qa, qb, qc, qd, ga, gb, gc, gd)
               * inv_det_g2 * (1.0 + r_qg * r_qg)
               + _frob2_compose(qa, qb, qc, qd, fa, fb, fc, fd)
               * inv_det_f2 * (1.0 + r_qf * r_qf))

        # ---- fold regularizers on the two parameterization maps
        det_mf = (row(jmf_ref, 0) * row(jmf_ref, 3)
                  - row(jmf_ref, 1) * row(jmf_ref, 2))
        det_mq = (row(jmq_ref, 0) * row(jmq_ref, 3)
                  - row(jmq_ref, 1) * row(jmq_ref, 2))
        ppd = ppd + REG_FOLD * (jnp.maximum(EPS - det_mf, 0.0)
                                + jnp.maximum(EPS - det_mq, 0.0))

        # ---- masked accumulate (select, not multiply: NaN/inf garbage in the
        # masked lanes can never leak into sum or count)
        acc_s = acc_s + jnp.where(valid, ppd, 0.0)
        acc_c = acc_c + valid.astype(jnp.float32)
        return acc_s, acc_c

    zero = jnp.zeros((1, STRIP), jnp.float32)
    acc_s, acc_c = lax.fori_loop(0, nstrips, strip_body, (zero, zero))

    # single merged, lane-dense output block: row 0 = partial sum, row 1 = count
    out_ref[0, 0:1, :] = acc_s
    out_ref[0, 1:2, :] = acc_c


# -------------------------------------------------------------------- wrapper
def _cdiv(a, b):
    return -(-a // b)


def _ceil_to(x, m):
    return _cdiv(x, m) * m


@functools.partial(jax.jit, static_argnames=("max_block_points",))
def collection_loss(map_src_f, map_src_q, J_F, J_Q, J_G, J_mf, J_mq,
                    *, max_block_points=65536):
    """Masked-mean collection loss. uv maps: (2, N); Jacobians: (4, N).

    Default tile = 65536 points/block: 6.3 MiB of HBM traffic per grid step
    (overhead-amortized on all generations) and ~28 MiB of double-buffered
    VMEM once the (2,.)/(4,.) blocks are sublane-padded to 8 rows -- inside
    the 48 MiB limit requested below and under v7x's 64 MiB/TC physical VMEM.
    """
    N = map_src_f.shape[-1]

    rows_needed = _ceil_to(_cdiv(N, LANES), STRIP_ROWS)   # 128-lane rows, strip aligned
    rows_cap = max(STRIP_ROWS,
                   (max_block_points // LANES) // STRIP_ROWS * STRIP_ROWS)
    tn_rows = min(rows_cap, rows_needed)
    # keep >= 2 grid blocks when the problem is large enough so both v7x
    # TensorCores get work (the grid axis is "parallel")
    if rows_needed >= 2 * STRIP_ROWS and _cdiv(N, tn_rows * LANES) < 2:
        tn_rows = _ceil_to(_cdiv(rows_needed, 2), STRIP_ROWS)
    block_pts = tn_rows * LANES
    nblk = _cdiv(N, block_pts)

    kernel = functools.partial(_collection_loss_kernel,
                               n_points=N, block_pts=block_pts)

    # Inputs are tiled in place -- no pad, no reshape, no extra HBM pass.
    # (pipeline_mode=pl.Buffered(3) on the Jacobian streams is a possible
    #  further tweak if profiling shows inter-step DMA bubbles.)
    uv_spec = pl.BlockSpec((2, block_pts), lambda i: (0, i))
    jac_spec = pl.BlockSpec((4, block_pts), lambda i: (0, i))
    out_spec = pl.BlockSpec((1, 2, STRIP), lambda i: (i, 0, 0))

    partials = pl.pallas_call(
        kernel,
        out_shape=jax.ShapeDtypeStruct((nblk, 2, STRIP), jnp.float32),
        grid_spec=pltpu.PrefetchScalarGridSpec(
            num_scalar_prefetch=0,
            grid=(nblk,),
            in_specs=[uv_spec, uv_spec,
                      jac_spec, jac_spec, jac_spec, jac_spec, jac_spec],
            out_specs=out_spec,
        ),
        compiler_params=pltpu.CompilerParams(
            dimension_semantics=("parallel",),      # no cross-step state
            vmem_limit_bytes=48 * 1024 * 1024),
        cost_estimate=pl.CostEstimate(
            flops=140 * N,
            transcendentals=3 * N,
            bytes_accessed=24 * 4 * N + nblk * 2 * STRIP * 4),
    )(map_src_f, map_src_q, J_F, J_Q, J_G, J_mf, J_mq)

    # tiny final reduction + masked mean (NaN if every point is out-of-domain,
    # matching the reference / torch module behavior)
    return jnp.sum(partials[:, 0, :]) / jnp.sum(partials[:, 1, :])


# ------------------------------------------------------------- pure-JAX reference
def reference_loss(map_src_f, map_src_q, J_F, J_Q, J_G, J_mf, J_mq):
    def unpack(j):  # (4, N) -> (N, 2, 2)
        return jnp.moveaxis(j, 0, 1).reshape(-1, 2, 2)

    Jf, Jq, Jg = unpack(J_F), unpack(J_Q), unpack(J_G)
    Jg_inv = jnp.linalg.inv(Jg)
    Jf_inv = jnp.linalg.inv(Jf)
    J_fhg = Jf @ Jg_inv
    J_qhg = Jq @ Jg_inv
    J_qhf = Jq @ Jf_inv

    def sd(J):
        F = jnp.swapaxes(J, 1, 2) @ J
        tr = F[:, 0, 0] + F[:, 1, 1]
        det = F[:, 0, 0] * F[:, 1, 1] - F[:, 0, 1] * F[:, 1, 0]
        return tr + tr / det

    def fold(j):
        Jm = unpack(j)
        d = Jm[:, 0, 0] * Jm[:, 1, 1] - Jm[:, 0, 1] * Jm[:, 1, 0]
        return REG_FOLD * jnp.maximum(EPS - d, 0.0)

    ppd = sd(J_fhg) + sd(J_qhg) + sd(J_qhf) + fold(J_mf) + fold(J_mq)
    out_f = jnp.sum(map_src_f ** 2, axis=0) > 1.0
    out_q = jnp.sum(map_src_q ** 2, axis=0) > 1.0
    in_mask = jnp.logical_not(jnp.logical_or(out_f, out_q))
    ppd = jnp.where(in_mask, ppd, 0.0)
    return ppd.sum() / in_mask.sum().astype(jnp.float32)


if __name__ == "__main__":
    key = jax.random.PRNGKey(0)
    N = 3333  # ragged N: exercises the un-padded tail block + multi-block grid
    k = jax.random.split(key, 7)

    # uv points: inside and outside the unit disk so both mask branches fire
    map_src_f = jax.random.uniform(k[0], (2, N), jnp.float32, -1.2, 1.2)
    map_src_q = jax.random.uniform(k[1], (2, N), jnp.float32, -1.2, 1.2)

    # well-conditioned synthetic Jacobians: J = I + 0.2 * noise (det stays ~1)
    eye_flat = jnp.array([1.0, 0.0, 0.0, 1.0], jnp.float32).reshape(4, 1)

    def make_jac(kk):
        return eye_flat + 0.2 * jax.random.normal(kk, (4, N), jnp.float32)

    J_F, J_Q, J_G, J_mf, J_mq = (make_jac(kk) for kk in k[2:7])

    ref = reference_loss(map_src_f, map_src_q, J_F, J_Q, J_G, J_mf, J_mq)

    # small blocks -> 4-block grid, multiple inner strips per block
    loss_small = collection_loss(map_src_f, map_src_q, J_F, J_Q, J_G,
                                 J_mf, J_mq, max_block_points=1024)
    loss_small = jax.block_until_ready(loss_small)

    # production tile size (forced 2-block split at this demo size)
    loss_big = collection_loss(map_src_f, map_src_q, J_F, J_Q, J_G, J_mf, J_mq)
    loss_big = jax.block_until_ready(loss_big)

    for loss in (loss_small, loss_big):
        assert jnp.isfinite(loss), "kernel produced non-finite loss"
        assert jnp.allclose(loss, ref, rtol=1e-4, atol=1e-5), (loss, ref)

    print("KERNEL_OK")
</pallas_src>

<mosaic_0001>
module attributes {stable_mosaic.version = 11 : i64} {
  func.func @_collection_loss_kernel(%arg0: i32, %arg1: memref<2x1024xf32, #tpu.memory_space<vmem>>, %arg2: memref<2x1024xf32, #tpu.memory_space<vmem>>, %arg3: memref<4x1024xf32, #tpu.memory_space<vmem>>, %arg4: memref<4x1024xf32, #tpu.memory_space<vmem>>, %arg5: memref<4x1024xf32, #tpu.memory_space<vmem>>, %arg6: memref<4x1024xf32, #tpu.memory_space<vmem>>, %arg7: memref<4x1024xf32, #tpu.memory_space<vmem>>, %arg8: memref<1x2x512xf32, #tpu.memory_space<vmem>>) attributes {dimension_semantics = [#tpu.dimension_semantics<parallel>], iteration_bounds = array<i64: 4>, scalar_prefetch = 0 : i64, scratch_operands = 0 : i64, tpu.core_type = #tpu.core_type<tc>, window_params = [{transform_indices = @transform_0, window_bounds = array<i64: 2, 1024>}, {transform_indices = @transform_1, window_bounds = array<i64: 2, 1024>}, {transform_indices = @transform_2, window_bounds = array<i64: 4, 1024>}, {transform_indices = @transform_3, window_bounds = array<i64: 4, 1024>}, {transform_indices = @transform_4, window_bounds = array<i64: 4, 1024>}, {transform_indices = @transform_5, window_bounds = array<i64: 4, 1024>}, {transform_indices = @transform_6, window_bounds = array<i64: 4, 1024>}, {transform_indices = @transform_7, window_bounds = array<i64: 1, 2, 512>}]} {
    %c1024_i32 = arith.constant 1024 : i32
    %0 = arith.muli %arg0, %c1024_i32 : i32
    %1 = tpu.iota {dimensions = array<i32: 1>} : vector<1x512xi32>
    %cst = arith.constant 0.000000e+00 : f32
    %2 = vector.broadcast %cst : f32 to vector<1x512xf32>
    %c0_i32 = arith.constant 0 : i32
    %c2_i32 = arith.constant 2 : i32
    %3 = arith.addi %c0_i32, %c2_i32 : i32
    %c1_i32 = arith.constant 1 : i32
    %4:2 = scf.for %arg9 = %c0_i32 to %3 step %c1_i32 iter_args(%arg10 = %2, %arg11 = %2) -> (vector<1x512xf32>, vector<1x512xf32>)  : i32 {
      %c512_i32 = arith.constant 512 : i32
      %11 = arith.muli %arg9, %c512_i32 : i32
      %12 = tpu.assume_multiple %11, 512 : i32
      %c0_5 = arith.constant 0 : index
      %13 = arith.index_cast %12 : i32 to index
      %14 = vector.load %arg1[%c0_5, %13] : memref<2x1024xf32, #tpu.memory_space<vmem>>, vector<1x512xf32>
      %c1_6 = arith.constant 1 : index
      %15 = arith.index_cast %12 : i32 to index
      %16 = vector.load %arg1[%c1_6, %15] : memref<2x1024xf32, #tpu.memory_space<vmem>>, vector<1x512xf32>
      %c0_7 = arith.constant 0 : index
      %17 = arith.index_cast %12 : i32 to index
      %18 = vector.load %arg2[%c0_7, %17] : memref<2x1024xf32, #tpu.memory_space<vmem>>, vector<1x512xf32>
      %c1_8 = arith.constant 1 : index
      %19 = arith.index_cast %12 : i32 to index
      %20 = vector.load %arg2[%c1_8, %19] : memref<2x1024xf32, #tpu.memory_space<vmem>>, vector<1x512xf32>
      %21 = arith.mulf %14, %14 : vector<1x512xf32>
      %22 = arith.mulf %16, %16 : vector<1x512xf32>
      %23 = arith.addf %21, %22 : vector<1x512xf32>
      %cst_9 = arith.constant 1.000000e+00 : f32
      %24 = vector.broadcast %cst_9 : f32 to vector<1x512xf32>
      %25 = arith.cmpf ole, %23, %24 : vector<1x512xf32>
      %26 = arith.mulf %18, %18 : vector<1x512xf32>
      %27 = arith.mulf %20, %20 : vector<1x512xf32>
      %28 = arith.addf %26, %27 : vector<1x512xf32>
      %cst_10 = arith.constant 1.000000e+00 : f32
      %29 = vector.broadcast %cst_10 : f32 to vector<1x512xf32>
      %30 = arith.cmpf ole, %28, %29 : vector<1x512xf32>
      %31 = arith.andi %25, %30 : vector<1x512xi1>
      %32 = arith.addi %0, %12 : i32
      %33 = vector.broadcast %32 : i32 to vector<1x512xi32>
      %34 = arith.addi %33, %1 : vector<1x512xi32>
      %c3333_i32 = arith.constant 3333 : i32
      %35 = vector.broadcast %c3333_i32 : i32 to vector<1x512xi32>
      %36 = arith.cmpi slt, %34, %35 : vector<1x512xi32>
      %37 = arith.andi %31, %36 : vector<1x512xi1>
      %c0_11 = arith.constant 0 : index
      %38 = arith.index_cast %12 : i32 to index
      %39 = vector.load %arg3[%c0_11, %38] : memref<4x1024xf32, #tpu.memory_space<vmem>>, vector<1x512xf32>
      %c1_12 = arith.constant 1 : index
      %40 = arith.index_cast %12 : i32 to index
      %41 = vector.load %arg3[%c1_12, %40] : memref<4x1024xf32, #tpu.memory_space<vmem>>, vector<1x512xf32>
      %c2 = arith.constant 2 : index
      %42 = arith.index_cast %12 : i32 to index
      %43 = vector.load %arg3[%c2, %42] : memref<4x1024xf32, #tpu.memory_space<vmem>>, vector<1x512xf32>
      %c3 = arith.constant 3 : index
      %44 = arith.index_cast %12 : i32 to index
      %45 = vector.load %arg3[%c3, %44] : memref<4x1024xf32, #tpu.memory_space<vmem>>, vector<1x512xf32>
      %c0_13 = arith.constant 0 : index
      %46 = arith.index_cast %12 : i32 to index
      %47 = vector.load %arg4[%c0_13, %46] : memref<4x1024xf32, #tpu.memory_space<vmem>>, vector<1x512xf32>
      %c1_14 = arith.constant 1 : index
      %48 = arith.index_cast %12 : i32 to index
      %49 = vector.load %arg4[%c1_14, %48] : memref<4x1024xf32, #tpu.memory_space<vmem>>, vector<1x512xf32>
      %c2_15 = arith.constant 2 : index
      %50 = arith.index_cast %12 : i32 to index
      %51 = vector.load %arg4[%c2_15, %50] : memref<4x1024xf32, #tpu.memory_space<vmem>>, vector<1x512xf32>
      %c3_16 = arith.constant 3 : index
      %52 = arith.index_cast %12 : i32 to index
      %53 = vector.load %arg4[%c3_16, %52] : memref<4x1024xf32, #tpu.memory_space<vmem>>, vector<1x512xf32>
      %c0_17 = arith.constant 0 : index
      %54 = arith.index_cast %12 : i32 to index
      %55 = vector.load %arg5[%c0_17, %54] : memref<4x1024xf32, #tpu.memory_space<vmem>>, vector<1x512xf32>
      %c1_18 = arith.constant 1 : index
      %56 = arith.index_cast %12 : i32 to index
      %57 = vector.load %arg5[%c1_18, %56] : memref<4x1024xf32, #tpu.memory_space<vmem>>, vector<1x512xf32>
      %c2_19 = arith.constant 2 : index
      %58 = arith.index_cast %12 : i32 to index
      %59 = vector.load %arg5[%c2_19, %58] : memref<4x1024xf32, #tpu.memory_space<vmem>>, vector<1x512xf32>
      %c3_20 = arith.constant 3 : index
      %60 = arith.index_cast %12 : i32 to index
      %61 = vector.load %arg5[%c3_20, %60] : memref<4x1024xf32, #tpu.memory_space<vmem>>, vector<1x512xf32>
      %62 = arith.mulf %39, %45 : vector<1x512xf32>
      %63 = arith.mulf %41, %43 : vector<1x512xf32>
      %64 = arith.subf %62, %63 : vector<1x512xf32>
      %65 = arith.mulf %47, %53 : vector<1x512xf32>
      %66 = arith.mulf %49, %51 : vector<1x512xf32>
      %67 = arith.subf %65, %66 : vector<1x512xf32>
      %68 = arith.mulf %55, %61 : vector<1x512xf32>
      %69 = arith.mulf %57, %59 : vector<1x512xf32>
      %70 = arith.subf %68, %69 : vector<1x512xf32>
      %71 = tpu.reciprocal %64 {approx = true} : vector<1x512xf32> -> vector<1x512xf32>
      %72 = arith.mulf %64, %71 : vector<1x512xf32>
      %cst_21 = arith.constant 2.000000e+00 : f32
      %73 = vector.broadcast %cst_21 : f32 to vector<1x512xf32>
      %74 = arith.subf %73, %72 : vector<1x512xf32>
      %75 = arith.mulf %71, %74 : vector<1x512xf32>
      %76 = tpu.reciprocal %67 {approx = true} : vector<1x512xf32> -> vector<1x512xf32>
      %77 = arith.mulf %67, %76 : vector<1x512xf32>
      %cst_22 = arith.constant 2.000000e+00 : f32
      %78 = vector.broadcast %cst_22 : f32 to vector<1x512xf32>
      %79 = arith.subf %78, %77 : vector<1x512xf32>
      %80 = arith.mulf %76, %79 : vector<1x512xf32>
      %81 = tpu.reciprocal %70 {approx = true} : vector<1x512xf32> -> vector<1x512xf32>
      %82 = arith.mulf %70, %81 : vector<1x512xf32>
      %cst_23 = arith.constant 2.000000e+00 : f32
      %83 = vector.broadcast %cst_23 : f32 to vector<1x512xf32>
      %84 = arith.subf %83, %82 : vector<1x512xf32>
      %85 = arith.mulf %81, %84 : vector<1x512xf32>
      %86 = arith.mulf %85, %85 : vector<1x512xf32>
      %87 = arith.mulf %75, %75 : vector<1x512xf32>
      %88 = arith.mulf %70, %75 : vector<1x512xf32>
      %89 = arith.mulf %70, %80 : vector<1x512xf32>
      %90 = arith.mulf %64, %80 : vector<1x512xf32>
      %91 = arith.mulf %39, %61 : vector<1x512xf32>
      %92 = arith.mulf %41, %59 : vector<1x512xf32>
      %93 = arith.subf %91, %92 : vector<1x512xf32>
      %94 = arith.mulf %41, %55 : vector<1x512xf32>
      %95 = arith.mulf %39, %57 : vector<1x512xf32>
      %96 = arith.subf %94, %95 : vector<1x512xf32>
      %97 = arith.mulf %43, %61 : vector<1x512xf32>
      %98 = arith.mulf %45, %59 : vector<1x512xf32>
      %99 = arith.subf %97, %98 : vector<1x512xf32>
      %100 = arith.mulf %45, %55 : vector<1x512xf32>
      %101 = arith.mulf %43, %57 : vector<1x512xf32>
      %102 = arith.subf %100, %101 : vector<1x512xf32>
      %103 = arith.mulf %93, %93 : vector<1x512xf32>
      %104 = arith.mulf %96, %96 : vector<1x512xf32>
      %105 = arith.addf %103, %104 : vector<1x512xf32>
      %106 = arith.mulf %99, %99 : vector<1x512xf32>
      %107 = arith.addf %105, %106 : vector<1x512xf32>
      %108 = arith.mulf %102, %102 : vector<1x512xf32>
      %109 = arith.addf %107, %108 : vector<1x512xf32>
      %110 = arith.mulf %109, %86 : vector<1x512xf32>
      %111 = arith.mulf %88, %88 : vector<1x512xf32>
      %cst_24 = arith.constant 1.000000e+00 : f32
      %112 = vector.broadcast %cst_24 : f32 to vector<1x512xf32>
      %113 = arith.addf %112, %111 : vector<1x512xf32>
      %114 = arith.mulf %110, %113 : vector<1x512xf32>
      %115 = arith.mulf %47, %61 : vector<1x512xf32>
      %116 = arith.mulf %49, %59 : vector<1x512xf32>
      %117 = arith.subf %115, %116 : vector<1x512xf32>
      %118 = arith.mulf %49, %55 : vector<1x512xf32>
      %119 = arith.mulf %47, %57 : vector<1x512xf32>
      %120 = arith.subf %118, %119 : vector<1x512xf32>
      %121 = arith.mulf %51, %61 : vector<1x512xf32>
      %122 = arith.mulf %53, %59 : vector<1x512xf32>
      %123 = arith.subf %121, %122 : vector<1x512xf32>
      %124 = arith.mulf %53, %55 : vector<1x512xf32>
      %125 = arith.mulf %51, %57 : vector<1x512xf32>
      %126 = arith.subf %124, %125 : vector<1x512xf32>
      %127 = arith.mulf %117, %117 : vector<1x512xf32>
      %128 = arith.mulf %120, %120 : vector<1x512xf32>
      %129 = arith.addf %127, %128 : vector<1x512xf32>
      %130 = arith.mulf %123, %123 : vector<1x512xf32>
      %131 = arith.addf %129, %130 : vector<1x512xf32>
      %132 = arith.mulf %126, %126 : vector<1x512xf32>
      %133 = arith.addf %131, %132 : vector<1x512xf32>
      %134 = arith.mulf %133, %86 : vector<1x512xf32>
      %135 = arith.mulf %89, %89 : vector<1x512xf32>
      %cst_25 = arith.constant 1.000000e+00 : f32
      %136 = vector.broadcast %cst_25 : f32 to vector<1x512xf32>
      %137 = arith.addf %136, %135 : vector<1x512xf32>
      %138 = arith.mulf %134, %137 : vector<1x512xf32>
      %139 = arith.addf %114, %138 : vector<1x512xf32>
      %140 = arith.mulf %47, %45 : vector<1x512xf32>
      %141 = arith.mulf %49, %43 : vector<1x512xf32>
      %142 = arith.subf %140, %141 : vector<1x512xf32>
      %143 = arith.mulf %49, %39 : vector<1x512xf32>
      %144 = arith.mulf %47, %41 : vector<1x512xf32>
      %145 = arith.subf %143, %144 : vector<1x512xf32>
      %146 = arith.mulf %51, %45 : vector<1x512xf32>
      %147 = arith.mulf %53, %43 : vector<1x512xf32>
      %148 = arith.subf %146, %147 : vector<1x512xf32>
      %149 = arith.mulf %53, %39 : vector<1x512xf32>
      %150 = arith.mulf %51, %41 : vector<1x512xf32>
      %151 = arith.subf %149, %150 : vector<1x512xf32>
      %152 = arith.mulf %142, %142 : vector<1x512xf32>
      %153 = arith.mulf %145, %145 : vector<1x512xf32>
      %154 = arith.addf %152, %153 : vector<1x512xf32>
      %155 = arith.mulf %148, %148 : vector<1x512xf32>
      %156 = arith.addf %154, %155 : vector<1x512xf32>
      %157 = arith.mulf %151, %151 : vector<1x512xf32>
      %158 = arith.addf %156, %157 : vector<1x512xf32>
      %159 = arith.mulf %158, %87 : vector<1x512xf32>
      %160 = arith.mulf %90, %90 : vector<1x512xf32>
      %cst_26 = arith.constant 1.000000e+00 : f32
      %161 = vector.broadcast %cst_26 : f32 to vector<1x512xf32>
      %162 = arith.addf %161, %160 : vector<1x512xf32>
      %163 = arith.mulf %159, %162 : vector<1x512xf32>
      %164 = arith.addf %139, %163 : vector<1x512xf32>
      %c0_27 = arith.constant 0 : index
      %165 = arith.index_cast %12 : i32 to index
      %166 = vector.load %arg6[%c0_27, %165] : memref<4x1024xf32, #tpu.memory_space<vmem>>, vector<1x512xf32>
      %c3_28 = arith.constant 3 : index
      %167 = arith.index_cast %12 : i32 to index
      %168 = vector.load %arg6[%c3_28, %167] : memref<4x1024xf32, #tpu.memory_space<vmem>>, vector<1x512xf32>
      %169 = arith.mulf %166, %168 : vector<1x512xf32>
      %c1_29 = arith.constant 1 : index
      %170 = arith.index_cast %12 : i32 to index
      %171 = vector.load %arg6[%c1_29, %170] : memref<4x1024xf32, #tpu.memory_space<vmem>>, vector<1x512xf32>
      %c2_30 = arith.constant 2 : index
      %172 = arith.index_cast %12 : i32 to index
      %173 = vector.load %arg6[%c2_30, %172] : memref<4x1024xf32, #tpu.memory_space<vmem>>, vector<1x512xf32>
      %174 = arith.mulf %171, %173 : vector<1x512xf32>
      %175 = arith.subf %169, %174 : vector<1x512xf32>
      %c0_31 = arith.constant 0 : index
      %176 = arith.index_cast %12 : i32 to index
      %177 = vector.load %arg7[%c0_31, %176] : memref<4x1024xf32, #tpu.memory_space<vmem>>, vector<1x512xf32>
      %c3_32 = arith.constant 3 : index
      %178 = arith.index_cast %12 : i32 to index
      %179 = vector.load %arg7[%c3_32, %178] : memref<4x1024xf32, #tpu.memory_space<vmem>>, vector<1x512xf32>
      %180 = arith.mulf %177, %179 : vector<1x512xf32>
      %c1_33 = arith.constant 1 : index
      %181 = arith.index_cast %12 : i32 to index
      %182 = vector.load %arg7[%c1_33, %181] : memref<4x1024xf32, #tpu.memory_space<vmem>>, vector<1x512xf32>
      %c2_34 = arith.constant 2 : index
      %183 = arith.index_cast %12 : i32 to index
      %184 = vector.load %arg7[%c2_34, %183] : memref<4x1024xf32, #tpu.memory_space<vmem>>, vector<1x512xf32>
      %185 = arith.mulf %182, %184 : vector<1x512xf32>
      %186 = arith.subf %180, %185 : vector<1x512xf32>
      %cst_35 = arith.constant 0.00999999977 : f32
      %187 = vector.broadcast %cst_35 : f32 to vector<1x512xf32>
      %188 = arith.subf %187, %175 : vector<1x512xf32>
      %cst_36 = arith.constant 0.000000e+00 : f32
      %189 = vector.broadcast %cst_36 : f32 to vector<1x512xf32>
      %190 = arith.maximumf %188, %189 : vector<1x512xf32>
      %cst_37 = arith.constant 0.00999999977 : f32
      %191 = vector.broadcast %cst_37 : f32 to vector<1x512xf32>
      %192 = arith.subf %191, %186 : vector<1x512xf32>
      %cst_38 = arith.constant 0.000000e+00 : f32
      %193 = vector.broadcast %cst_38 : f32 to vector<1x512xf32>
      %194 = arith.maximumf %192, %193 : vector<1x512xf32>
      %195 = arith.addf %190, %194 : vector<1x512xf32>
      %cst_39 = arith.constant 1.000000e+02 : f32
      %196 = vector.broadcast %cst_39 : f32 to vector<1x512xf32>
      %197 = arith.mulf %196, %195 : vector<1x512xf32>
      %198 = arith.addf %164, %197 : vector<1x512xf32>
      %cst_40 = arith.constant 0.000000e+00 : f32
      %199 = vector.broadcast %cst_40 : f32 to vector<1x512xf32>
      %200 = arith.select %37, %198, %199 : vector<1x512xi1>, vector<1x512xf32>
      %201 = arith.addf %arg10, %200 : vector<1x512xf32>
      %202 = arith.extui %37 : vector<1x512xi1> to vector<1x512xi32>
      %203 = arith.sitofp %202 : vector<1x512xi32> to vector<1x512xf32>
      %204 = arith.addf %arg11, %203 : vector<1x512xf32>
      scf.yield %201, %204 : vector<1x512xf32>, vector<1x512xf32>
    }
    %c2_i32_0 = arith.constant 2 : i32
    %c0 = arith.constant 0 : index
    %c0_1 = arith.constant 0 : index
    %c0_2 = arith.constant 0 : index
    %5 = vector.load %arg8[%c0, %c0_1, %c0_2] : memref<1x2x512xf32, #tpu.memory_space<vmem>>, vector<1x1x512xf32>
    %6 = vector.shape_cast %5 : vector<1x1x512xf32> to vector<1x512xf32>
    %7 = vector.shape_cast %4#0 : vector<1x512xf32> to vector<1x1x512xf32>
    tpu.vector_store %arg8[%c0, %c0_1, %c0_2], %7 {strides = array<i32>} : memref<1x2x512xf32, #tpu.memory_space<vmem>>, vector<1x1x512xf32>,
    %c0_3 = arith.constant 0 : index
    %c1 = arith.constant 1 : index
    %c0_4 = arith.constant 0 : index
    %8 = vector.load %arg8[%c0_3, %c1, %c0_4] : memref<1x2x512xf32, #tpu.memory_space<vmem>>, vector<1x1x512xf32>
    %9 = vector.shape_cast %8 : vector<1x1x512xf32> to vector<1x512xf32>
    %10 = vector.shape_cast %4#1 : vector<1x512xf32> to vector<1x1x512xf32>
    tpu.vector_store %arg8[%c0_3, %c1, %c0_4], %10 {strides = array<i32>} : memref<1x2x512xf32, #tpu.memory_space<vmem>>, vector<1x1x512xf32>,
    return
  }
  func.func @transform_0(%arg0: i32) -> (i32, i32) {
    %c0_i32 = arith.constant 0 : i32
    %c0_i32_0 = arith.constant 0 : i32
    return %c0_i32, %arg0 : i32, i32
  }
  func.func @transform_1(%arg0: i32) -> (i32, i32) {
    %c0_i32 = arith.constant 0 : i32
    %c0_i32_0 = arith.constant 0 : i32
    return %c0_i32, %arg0 : i32, i32
  }
  func.func @transform_2(%arg0: i32) -> (i32, i32) {
    %c0_i32 = arith.constant 0 : i32
    %c0_i32_0 = arith.constant 0 : i32
    return %c0_i32, %arg0 : i32, i32
  }
  func.func @transform_3(%arg0: i32) -> (i32, i32) {
    %c0_i32 = arith.constant 0 : i32
    %c0_i32_0 = arith.constant 0 : i32
    return %c0_i32, %arg0 : i32, i32
  }
  func.func @transform_4(%arg0: i32) -> (i32, i32) {
    %c0_i32 = arith.constant 0 : i32
    %c0_i32_0 = arith.constant 0 : i32
    return %c0_i32, %arg0 : i32, i32
  }
  func.func @transform_5(%arg0: i32) -> (i32, i32) {
    %c0_i32 = arith.constant 0 : i32
    %c0_i32_0 = arith.constant 0 : i32
    return %c0_i32, %arg0 : i32, i32
  }
  func.func @transform_6(%arg0: i32) -> (i32, i32) {
    %c0_i32 = arith.constant 0 : i32
    %c0_i32_0 = arith.constant 0 : i32
    return %c0_i32, %arg0 : i32, i32
  }
  func.func @transform_7(%arg0: i32) -> (i32, i32, i32) {
    %c0_i32 = arith.constant 0 : i32
    %c0_i32_0 = arith.constant 0 : i32
    %c0_i32_1 = arith.constant 0 : i32
    return %arg0, %c0_i32, %c0_i32_0 : i32, i32, i32
  }
}

</mosaic_0001>

<bundles_post_ra>
// kernel: collection_loss.1
= control target key start
LH: loop header
LB: loop body
LE: loop exit
PB: predicated region body
PF: predicated region fallthrough
CT: control target
= control target key end

     0   :  { %12 = vsyncpa [#allocation3], 0  ;;  %s2146_s0 = inlined_call_operand.hbm [shape: f32[2,3333], index: 0, kind: input, shape index: {}]   ;;  %s2147_s1 = inlined_call_operand.hbm [shape: f32[2,3333], index: 1, kind: input, shape index: {}]   ;;  %s2148_s2 = inlined_call_operand.hbm [shape: f32[4,3333], index: 2, kind: input, shape index: {}]   ;;  %s2149_s3 = inlined_call_operand.hbm [shape: f32[4,3333], index: 3, kind: input, shape index: {}]   ;;  %s2150_s4 = inlined_call_operand.hbm [shape: f32[4,3333], index: 4, kind: input, shape index: {}]   ;;  %s2151_s5 = inlined_call_operand.hbm [shape: f32[4,3333], index: 5, kind: input, shape index: {}]   ;;  %s2152_s6 = inlined_call_operand.hbm [shape: f32[4,3333], index: 6, kind: input, shape index: {}]   ;;  %s2153_s7 = inlined_call_operand.vmem [shape: f32[4,2,512], index: 7, kind: output, shape index: {}]  }
   0x1   :  { %14 = vsyncpa [#allocation3 + $0x1], 0 }
   0x2   :  { %15 = vsyncpa [#allocation5], 0 }
   0x3   :  { %17 = vsyncpa [#allocation5 + $0x1], 0 }
   0x4   :  { %18 = vsyncpa [#allocation8], 0 }
   0x5   :  { %20 = vsyncpa [#allocation8 + $0x1], 0 }
   0x6   :  { %21 = vsyncpa [#allocation11], 0 }
   0x7   :  { %23 = vsyncpa [#allocation11 + $0x1], 0  ;;  %s1628_s24 = smov 0   ;;  %s1630_s25 = smov 0  }
   0x8   :  { %s1632_s26 = smov 0   ;;  %s1634_s27 = smov 0  }
   0x9 LB: > { %s1647_s28 = sadd.s32 4294967295, %s1565_s27   ;;  %s1650_s29 = sadd.s32 1, %s1565_s27   ;;  %s1565_s27 = sphi %s1634_s27, %s2185_s27   ;;  %s1561_s26 = sphi %s1632_s26, %s2189_s26   ;;  %s1557_s25 = sphi %s1630_s25, %s2188_s25   ;;  %s1553_s24 = sphi %s1628_s24, %s2187_s24  }
   0xa   : > { %2162 = sst [smem:[#allocation17_spill]] %s1650_s29  ;;  %s33_s30 = ssub.s32 %s1565_s27, %s1650_s29 }
   0xb   : > { %s36_s8 = sadd.s32 1, %s1561_s26  ;;  %p34_p0 = scmp.eq.s32.totalorder %s33_s30, 0 }
   0xc   : > { %p43_p1 = scmp.ne.s32.totalorder %s1561_s26, %s1557_s25  ;;  %p44_p2 = scmp.eq.s32.totalorder %s1565_s27, 0 }
   0xd   : > { %p49_p3 = scmp.ne.s32.totalorder %s1557_s25, %s1553_s24  ;;  %p50_p5 = scmp.eq.s32.totalorder %s1647_s28, 0 }
   0xe   : > { %s1660_s9 = scalar_select %p34_p0, %s1561_s26, %s36_s8  }
   0xf   : > { %p1662_p4 = por %p44_p2, %p43_p1  ;;  %p1667_p6 = por %p50_p5, %p49_p3 }
  0x10   : > { %2163 = sst [smem:[#allocation18_spill]] %s1660_s9  ;;  %p1065_p7 = scmp.ge.s32.totalorder %s1565_s27, 4 }
  0x12   : > { %251 = sbr.rel (%p1065_p7) target bundleno = 274 (0x112), region = 16 }
  0x17   : > { %254 = sbr.rel (!%p1662_p4) target bundleno = 59 (0x3b), region = 20  ;;  %s255_s12 = sand.u32 (%p1662_p4), 1, %s1561_s26  }
  0x18   : > { %s1067_s13 = sshll.u32 (%p1662_p4), %s1565_s27, 3  ;;  %s1066_s14 = sshll.u32 (%p1662_p4), %s255_s12, 4 }
  0x19   : > { %s261_s15 = ssub.s32 (%p1662_p4), 27, %s1067_s13  ;;  %s1679_s19 = scalar_lea.sflag (%p1662_p4), [#allocation3], %s255_s12 }
  0x1a   : > { %p262_p8 = scmp.lt.s32.totalorder (%p1662_p4), %s261_s15, 8  ;;  %s259_s20 = scalar_lea.vmem (%p1662_p4), [#allocation2], %s1066_s14 }
  0x1c   : > { %s2191_s15 = smov (!%p262_p8, %s261_s15), 8 }
  0x1d   : > { %s1068_s16 = sshll.u32 %s2191_s15, 1 }
  0x1e   : > { %s265_s17 = ssub.s32 16, %s1068_s16 }
  0x1f   : > { %s266_s18 = sshll.u32 %s265_s17, 4 }
  0x20   : > { %267 = vsyncadd %s1679_s19, %s266_s18  ;;  %p1682_p9 = scmp.ne.s32.totalorder %s1068_s16, 0  ;;  %s1155_s22 = sshll.u32 %s1565_s27, 4 }
  0x21   : > { %s270_s30 = scalar_lea.hbm %s2146_s0, %s1155_s22  ;;  %s2154_s8 = sshll.u32 %s2191_s15, 5 }
  0x22   : > { %s273_s13 = sshll.u32 %s270_s30, 4  ;;  %s1691_s12 = sshll.u32 %s259_s20, 4  ;;  %s274_s13 = int_to_ptr.hbm [resolvable:$true] %s273_s13  ;;  %s276_s12 = int_to_ptr.vmem [resolvable:$true] %s1691_s12 }
  0x23   : > { %s1234_s14 = sshra.s32 %s274_s13, 4  ;;  %s1236_s16 = sshrl.u32 %s2154_s8, 4  ;;  %s1235_s14 = int_to_ptr.hbm [resolvable:$true] %s1234_s14 }
  0x24   : > { %s1241_s17 = scalar_lea.hbm %s1235_s14, %s1236_s16  ;;  %s1245_s22 = scalar_lea.hbm %s2146_s0, 54 }
  0x25   : > { %p1242_p10 = scmp.ne.s32.totalorder %s1235_s14, %s1241_s17  ;;  %p1246_p13 = scmp.lt.s32.totalorder %s1235_s14, %s2146_s0 }
  0x26   : > { %p1247_p0 = scmp.lt.s32.totalorder %s1245_s22, %s1241_s17 }
  0x27   : > { %p1243_p11 = pnand %p1242_p10, %p1682_p9 }
  0x28   : > { %p1248_p1 = por %p1247_p0, %p1246_p13 }
  0x29   : > { %p1244_p12 = pneg %p1243_p11 }
  0x2b   : > { %p1249_p2 = pnand %p1248_p1, %p1244_p12 }
  0x2d   : > { %1252 = shalt.err (!%p1249_p2)
}
  0x2e   : > { %s1253_s20 = sshra.s32 %s276_s12, 4  ;;  %s1579_s8 = smov [#allocation2]   ;;  %s1254_s20 = int_to_ptr.vmem [resolvable:$true] %s1253_s20 }
  0x2f   : > { %s1260_s30 = scalar_lea.vmem %s1254_s20, %s1236_s16  ;;  %s1264_s29 = scalar_lea.vmem %s1579_s8, 32 }
  0x30   : > { %p1261_p3 = scmp.ne.s32.totalorder %s1254_s20, %s1260_s30  ;;  %p1266_p8 = scmp.lt.s32.totalorder %s1264_s29, %s1260_s30 }
  0x32   : > { %p1262_p5 = pnand %p1261_p3, %p1682_p9 }
  0x34   : > { %p1263_p7 = pneg %p1262_p5 }
  0x36   : > { %p1268_p10 = pnand %p1266_p8, %p1263_p7 }
  0x38   : > { %1271 = shalt.err (!%p1268_p10)
}
  0x39   : > { %s2167_s9 = sshll.u32 %s2191_s15, 5 }
  0x3a   : > { %278 = dma.hbm_to_vmem [thread:$0]  (%p1682_p9), %s274_s13, %s2167_s9, %s276_s12, %s1679_s19  }
  0x3b PF: > { %281 = sbr.rel (!%p1662_p4) target bundleno = 95 (0x5f), region = 24  ;;  %s282_s14 = sand.u32 (%p1662_p4), 1, %s1565_s27  }
  0x3c   : > { %s284_s16 = sand.u32 (%p1662_p4), 1, %s1561_s26   ;;  %s1074_s8 = sshll.u32 (%p1662_p4), %s1565_s27, 3 }
  0x3d   : > { %s1073_s17 = sshll.u32 (%p1662_p4), %s284_s16, 4  ;;  %s288_s29 = ssub.s32 (%p1662_p4), 27, %s1074_s8 }
  0x3e   : > { %p289_p11 = scmp.lt.s32.totalorder (%p1662_p4), %s288_s29, 8  ;;  %s1719_s19 = scalar_lea.sflag (%p1662_p4), [#allocation5], %s282_s14 }
  0x3f   : > { %s286_s13 = scalar_lea.vmem (%p1662_p4), [#allocation4], %s1073_s17 }
  0x40   : > { %s2193_s29 = smov (!%p289_p11, %s288_s29), 8 }
  0x41   : > { %s1075_s21 = sshll.u32 %s2193_s29, 1 }
  0x42   : > { %s292_s18 = ssub.s32 16, %s1075_s21 }
  0x43   : > { %s293_s15 = sshll.u32 %s292_s18, 4 }
  0x44   : > { %294 = vsyncadd %s1719_s19, %s293_s15  ;;  %p1722_p9 = scmp.ne.s32.totalorder %s1075_s21, 0  ;;  %s1156_s22 = sshll.u32 %s1565_s27, 4 }
  0x45   : > { %s297_s20 = scalar_lea.hbm %s2147_s1, %s1156_s22  ;;  %s2157_s30 = sshll.u32 %s2193_s29, 5 }
  0x46   : > { %s300_s9 = sshll.u32 %s297_s20, 4  ;;  %s1731_s14 = sshll.u32 %s286_s13, 4  ;;  %s301_s9 = int_to_ptr.hbm [resolvable:$true] %s300_s9  ;;  %s303_s14 = int_to_ptr.vmem [resolvable:$true] %s1731_s14 }
  0x47   : > { %s1273_s16 = sshra.s32 %s301_s9, 4  ;;  %s1275_s17 = sshrl.u32 %s2157_s30, 4  ;;  %s1274_s16 = int_to_ptr.hbm [resolvable:$true] %s1273_s16 }
  0x48   : > { %s1280_s8 = scalar_lea.hbm %s1274_s16, %s1275_s17  ;;  %s1284_s15 = scalar_lea.hbm %s2147_s1, 54 }
  0x49   : > { %p1281_p12 = scmp.ne.s32.totalorder %s1274_s16, %s1280_s8  ;;  %p1285_p1 = scmp.lt.s32.totalorder %s1274_s16, %s2147_s1 }
  0x4a   : > { %p1286_p2 = scmp.lt.s32.totalorder %s1284_s15, %s1280_s8 }
  0x4b   : > { %p1282_p13 = pnand %p1281_p12, %p1722_p9 }
  0x4c   : > { %p1287_p3 = por %p1286_p2, %p1285_p1 }
  0x4d   : > { %p1283_p0 = pneg %p1282_p13 }
  0x4f   : > { %p1288_p5 = pnand %p1287_p3, %p1283_p0 }
  0x51   : > { %1291 = shalt.err (!%p1288_p5)
}
  0x52   : > { %s1292_s13 = sshra.s32 %s303_s14, 4  ;;  %s1580_s20 = smov [#allocation4]   ;;  %s1293_s13 = int_to_ptr.vmem [resolvable:$true] %s1292_s13 }
  0x53   : > { %s1299_s24 = scalar_lea.vmem %s1293_s13, %s1275_s17  ;;  %s1303_s30 = scalar_lea.vmem %s1580_s20, 32 }
  0x54   : > { %p1300_p7 = scmp.ne.s32.totalorder %s1293_s13, %s1299_s24  ;;  %p1305_p11 = scmp.lt.s32.totalorder %s1303_s30, %s1299_s24 }
  0x56   : > { %p1301_p8 = pnand %p1300_p7, %p1722_p9 }
  0x58   : > { %p1302_p10 = pneg %p1301_p8 }
  0x5a   : > { %p1307_p12 = pnand %p1305_p11, %p1302_p10 }
  0x5c   : > { %1310 = shalt.err (!%p1307_p12)
}
  0x5d   : > { %s2169_s16 = sshll.u32 %s2193_s29, 5 }
  0x5e   : > { %305 = dma.hbm_to_vmem [thread:$0]  (%p1722_p9), %s301_s9, %s2169_s16, %s303_s14, %s1719_s19  }
  0x5f PF: > { %308 = sbr.rel (!%p1662_p4) target bundleno = 131 (0x83), region = 28  ;;  %s309_s17 = sand.u32 (%p1662_p4), 1, %s1565_s27  }
  0x60   : > { %s311_s8 = sand.u32 (%p1662_p4), 1, %s1561_s26   ;;  %s1081_s18 = sshll.u32 (%p1662_p4), %s1565_s27, 3 }
  0x61   : > { %s1080_s21 = sshll.u32 (%p1662_p4), %s311_s8, 5  ;;  %s315_s30 = ssub.s32 (%p1662_p4), 27, %s1081_s18 }
  0x62   : > { %p316_p13 = scmp.lt.s32.totalorder (%p1662_p4), %s315_s30, 8  ;;  %s1759_s19 = scalar_lea.sflag (%p1662_p4), [#allocation5], %s309_s17 }
  0x63   : > { %s313_s9 = scalar_lea.vmem (%p1662_p4), [#allocation6], %s1080_s21 }
  0x64   : > { %s2195_s30 = smov (!%p316_p13, %s315_s30), 8 }
  0x65   : > { %s1082_s12 = sshll.u32 %s2195_s30, 2 }
  0x66   : > { %s319_s15 = ssub.s32 32, %s1082_s12 }
  0x67   : > { %s320_s29 = sshll.u32 %s319_s15, 4 }
  0x68   : > { %321 = vsyncadd %s1759_s19, %s320_s29  ;;  %p1762_p9 = scmp.ne.s32.totalorder %s1082_s12, 0  ;;  %s1157_s22 = sshll.u32 %s1565_s27, 5 }
  0x69   : > { %s324_s24 = scalar_lea.hbm %s2148_s2, %s1157_s22  ;;  %s2158_s20 = sshll.u32 %s2195_s30, 6 }
  0x6a   : > { %s327_s16 = sshll.u32 %s324_s24, 4  ;;  %s1771_s17 = sshll.u32 %s313_s9, 4  ;;  %s328_s16 = int_to_ptr.hbm [resolvable:$true] %s327_s16  ;;  %s330_s17 = int_to_ptr.vmem [resolvable:$true] %s1771_s17 }
  0x6b   : > { %s1312_s8 = sshra.s32 %s328_s16, 4  ;;  %s1314_s21 = sshrl.u32 %s2158_s20, 4  ;;  %s1313_s8 = int_to_ptr.hbm [resolvable:$true] %s1312_s8 }
  0x6c   : > { %s1319_s18 = scalar_lea.hbm %s1313_s8, %s1314_s21  ;;  %s1323_s29 = scalar_lea.hbm %s2148_s2, 108 }
  0x6d   : > { %p1320_p0 = scmp.ne.s32.totalorder %s1313_s8, %s1319_s18  ;;  %p1324_p3 = scmp.lt.s32.totalorder %s1313_s8, %s2148_s2 }
  0x6e   : > { %p1325_p5 = scmp.lt.s32.totalorder %s1323_s29, %s1319_s18 }
  0x6f   : > { %p1321_p1 = pnand %p1320_p0, %p1762_p9 }
  0x70   : > { %p1326_p7 = por %p1325_p5, %p1324_p3 }
  0x71   : > { %p1322_p2 = pneg %p1321_p1 }
  0x73   : > { %p1327_p8 = pnand %p1326_p7, %p1322_p2 }
  0x75   : > { %1330 = shalt.err (!%p1327_p8)
}
  0x76   : > { %s1331_s9 = sshra.s32 %s330_s17, 4  ;;  %s1581_s24 = smov [#allocation6]   ;;  %s1332_s9 = int_to_ptr.vmem [resolvable:$true] %s1331_s9 }
  0x77   : > { %s1338_s13 = scalar_lea.vmem %s1332_s9, %s1314_s21  ;;  %s1342_s20 = scalar_lea.vmem %s1581_s24, 64 }
  0x78   : > { %p1339_p10 = scmp.ne.s32.totalorder %s1332_s9, %s1338_s13  ;;  %p1344_p13 = scmp.lt.s32.totalorder %s1342_s20, %s1338_s13 }
  0x7a   : > { %p1340_p11 = pnand %p1339_p10, %p1762_p9 }
  0x7c   : > { %p1341_p12 = pneg %p1340_p11 }
  0x7e   : > { %p1346_p0 = pnand %p1344_p13, %p1341_p12 }
  0x80   : > { %1349 = shalt.err (!%p1346_p0)
}
  0x81   : > { %s2171_s8 = sshll.u32 %s2195_s30, 6 }
  0x82   : > { %332 = dma.hbm_to_vmem [thread:$0]  (%p1762_p9), %s328_s16, %s2171_s8, %s330_s17, %s1759_s19  }
  0x83 PF: > { %335 = sbr.rel (!%p1662_p4) target bundleno = 167 (0xa7), region = 32  ;;  %s336_s21 = sand.u32 (%p1662_p4), 1, %s1565_s27  }
  0x84   : > { %s338_s18 = sand.u32 (%p1662_p4), 1, %s1561_s26   ;;  %s1088_s15 = sshll.u32 (%p1662_p4), %s1565_s27, 3 }
  0x85   : > { %s1087_s12 = sshll.u32 (%p1662_p4), %s338_s18, 5  ;;  %s342_s20 = ssub.s32 (%p1662_p4), 27, %s1088_s15 }
  0x86   : > { %p343_p1 = scmp.lt.s32.totalorder (%p1662_p4), %s342_s20, 8  ;;  %s1799_s19 = scalar_lea.sflag (%p1662_p4), [#allocation8], %s336_s21 }
  0x87   : > { %s340_s16 = scalar_lea.vmem (%p1662_p4), [#allocation7], %s1087_s12 }
  0x88   : > { %s2197_s20 = smov (!%p343_p1, %s342_s20), 8 }
  0x89   : > { %s1089_s14 = sshll.u32 %s2197_s20, 2 }
  0x8a   : > { %s346_s29 = ssub.s32 32, %s1089_s14 }
  0x8b   : > { %s347_s30 = sshll.u32 %s346_s29, 4 }
  0x8c   : > { %348 = vsyncadd %s1799_s19, %s347_s30  ;;  %p1802_p9 = scmp.ne.s32.totalorder %s1089_s14, 0  ;;  %s1158_s22 = sshll.u32 %s1565_s27, 5 }
  0x8d   : > { %s351_s13 = scalar_lea.hbm %s2149_s3, %s1158_s22  ;;  %s2159_s24 = sshll.u32 %s2197_s20, 6 }
  0x8e   : > { %s354_s8 = sshll.u32 %s351_s13, 4  ;;  %s1811_s21 = sshll.u32 %s340_s16, 4  ;;  %s355_s8 = int_to_ptr.hbm [resolvable:$true] %s354_s8  ;;  %s357_s21 = int_to_ptr.vmem [resolvable:$true] %s1811_s21 }
  0x8f   : > { %s1351_s18 = sshra.s32 %s355_s8, 4  ;;  %s1353_s12 = sshrl.u32 %s2159_s24, 4  ;;  %s1352_s18 = int_to_ptr.hbm [resolvable:$true] %s1351_s18 }
  0x90   : > { %s1358_s15 = scalar_lea.hbm %s1352_s18, %s1353_s12  ;;  %s1362_s30 = scalar_lea.hbm %s2149_s3, 108 }
  0x91   : > { %p1359_p2 = scmp.ne.s32.totalorder %s1352_s18, %s1358_s15  ;;  %p1363_p7 = scmp.lt.s32.totalorder %s1352_s18, %s2149_s3 }
  0x92   : > { %p1364_p8 = scmp.lt.s32.totalorder %s1362_s30, %s1358_s15 }
  0x93   : > { %p1360_p3 = pnand %p1359_p2, %p1802_p9 }
  0x94   : > { %p1365_p10 = por %p1364_p8, %p1363_p7 }
  0x95   : > { %p1361_p5 = pneg %p1360_p3 }
  0x97   : > { %p1366_p11 = pnand %p1365_p10, %p1361_p5 }
  0x99   : > { %1369 = shalt.err (!%p1366_p11)
}
  0x9a   : > { %s1370_s16 = sshra.s32 %s357_s21, 4  ;;  %s1582_s13 = smov [#allocation7]   ;;  %s1371_s16 = int_to_ptr.vmem [resolvable:$true] %s1370_s16 }
  0x9b   : > { %s1377_s9 = scalar_lea.vmem %s1371_s16, %s1353_s12  ;;  %s1381_s24 = scalar_lea.vmem %s1582_s13, 64 }
  0x9c   : > { %p1378_p12 = scmp.ne.s32.totalorder %s1371_s16, %s1377_s9  ;;  %p1383_p1 = scmp.lt.s32.totalorder %s1381_s24, %s1377_s9 }
  0x9e   : > { %p1379_p13 = pnand %p1378_p12, %p1802_p9 }
  0xa0   : > { %p1380_p0 = pneg %p1379_p13 }
  0xa2   : > { %p1385_p2 = pnand %p1383_p1, %p1380_p0 }
  0xa4   : > { %1388 = shalt.err (!%p1385_p2)
}
  0xa5   : > { %s2173_s18 = sshll.u32 %s2197_s20, 6 }
  0xa6   : > { %359 = dma.hbm_to_vmem [thread:$0]  (%p1802_p9), %s355_s8, %s2173_s18, %s357_s21, %s1799_s19  }
  0xa7 PF: > { %362 = sbr.rel (!%p1662_p4) target bundleno = 203 (0xcb), region = 36  ;;  %s363_s12 = sand.u32 (%p1662_p4), 1, %s1565_s27  }
  0xa8   : > { %s365_s15 = sand.u32 (%p1662_p4), 1, %s1561_s26   ;;  %s1095_s29 = sshll.u32 (%p1662_p4), %s1565_s27, 3 }
  0xa9   : > { %s1094_s14 = sshll.u32 (%p1662_p4), %s365_s15, 5  ;;  %s369_s24 = ssub.s32 (%p1662_p4), 27, %s1095_s29 }
  0xaa   : > { %p370_p3 = scmp.lt.s32.totalorder (%p1662_p4), %s369_s24, 8  ;;  %s1839_s19 = scalar_lea.sflag (%p1662_p4), [#allocation8], %s363_s12 }
  0xab   : > { %s367_s8 = scalar_lea.vmem (%p1662_p4), [#allocation9], %s1094_s14 }
  0xac   : > { %s2199_s24 = smov (!%p370_p3, %s369_s24), 8 }
  0xad   : > { %s1096_s17 = sshll.u32 %s2199_s24, 2 }
  0xae   : > { %s373_s30 = ssub.s32 32, %s1096_s17 }
  0xaf   : > { %s374_s20 = sshll.u32 %s373_s30, 4 }
  0xb0   : > { %375 = vsyncadd %s1839_s19, %s374_s20  ;;  %p1842_p9 = scmp.ne.s32.totalorder %s1096_s17, 0  ;;  %s1159_s22 = sshll.u32 %s1565_s27, 5 }
  0xb1   : > { %s378_s9 = scalar_lea.hbm %s2150_s4, %s1159_s22  ;;  %s2160_s13 = sshll.u32 %s2199_s24, 6 }
  0xb2   : > { %s381_s18 = sshll.u32 %s378_s9, 4  ;;  %s1851_s12 = sshll.u32 %s367_s8, 4  ;;  %s382_s18 = int_to_ptr.hbm [resolvable:$true] %s381_s18  ;;  %s384_s12 = int_to_ptr.vmem [resolvable:$true] %s1851_s12 }
  0xb3   : > { %s1390_s15 = sshra.s32 %s382_s18, 4  ;;  %s1392_s14 = sshrl.u32 %s2160_s13, 4  ;;  %s1391_s15 = int_to_ptr.hbm [resolvable:$true] %s1390_s15 }
  0xb4   : > { %s1397_s29 = scalar_lea.hbm %s1391_s15, %s1392_s14  ;;  %s1401_s20 = scalar_lea.hbm %s2150_s4, 108 }
  0xb5   : > { %p1398_p5 = scmp.ne.s32.totalorder %s1391_s15, %s1397_s29  ;;  %p1402_p10 = scmp.lt.s32.totalorder %s1391_s15, %s2150_s4 }
  0xb6   : > { %p1403_p11 = scmp.lt.s32.totalorder %s1401_s20, %s1397_s29 }
  0xb7   : > { %p1399_p7 = pnand %p1398_p5, %p1842_p9 }
  0xb8   : > { %p1404_p12 = por %p1403_p11, %p1402_p10 }
  0xb9   : > { %p1400_p8 = pneg %p1399_p7 }
  0xbb   : > { %p1405_p13 = pnand %p1404_p12, %p1400_p8 }
  0xbd   : > { %1408 = shalt.err (!%p1405_p13)
}
  0xbe   : > { %s1409_s8 = sshra.s32 %s384_s12, 4  ;;  %s1583_s9 = smov [#allocation9]   ;;  %s1410_s8 = int_to_ptr.vmem [resolvable:$true] %s1409_s8 }
  0xbf   : > { %s1416_s16 = scalar_lea.vmem %s1410_s8, %s1392_s14  ;;  %s1420_s13 = scalar_lea.vmem %s1583_s9, 64 }
  0xc0   : > { %p1417_p0 = scmp.ne.s32.totalorder %s1410_s8, %s1416_s16  ;;  %p1422_p3 = scmp.lt.s32.totalorder %s1420_s13, %s1416_s16 }
  0xc2   : > { %p1418_p1 = pnand %p1417_p0, %p1842_p9 }
  0xc4   : > { %p1419_p2 = pneg %p1418_p1 }
  0xc6   : > { %p1424_p5 = pnand %p1422_p3, %p1419_p2 }
  0xc8   : > { %1427 = shalt.err (!%p1424_p5)
}
  0xc9   : > { %s2175_s15 = sshll.u32 %s2199_s24, 6 }
  0xca   : > { %386 = dma.hbm_to_vmem [thread:$0]  (%p1842_p9), %s382_s18, %s2175_s15, %s384_s12, %s1839_s19  }
  0xcb PF: > { %389 = sbr.rel (!%p1662_p4) target bundleno = 239 (0xef), region = 40  ;;  %s390_s14 = sand.u32 (%p1662_p4), 1, %s1565_s27  }
  0xcc   : > { %s392_s29 = sand.u32 (%p1662_p4), 1, %s1561_s26   ;;  %s1102_s30 = sshll.u32 (%p1662_p4), %s1565_s27, 3 }
  0xcd   : > { %s1101_s17 = sshll.u32 (%p1662_p4), %s392_s29, 5  ;;  %s396_s13 = ssub.s32 (%p1662_p4), 27, %s1102_s30 }
  0xce   : > { %p397_p7 = scmp.lt.s32.totalorder (%p1662_p4), %s396_s13, 8  ;;  %s1879_s19 = scalar_lea.sflag (%p1662_p4), [#allocation11], %s390_s14 }
  0xcf   : > { %s394_s18 = scalar_lea.vmem (%p1662_p4), [#allocation10], %s1101_s17 }
  0xd0   : > { %s2201_s13 = smov (!%p397_p7, %s396_s13), 8 }
  0xd1   : > { %s1103_s21 = sshll.u32 %s2201_s13, 2 }
  0xd2   : > { %s400_s20 = ssub.s32 32, %s1103_s21 }
  0xd3   : > { %s401_s24 = sshll.u32 %s400_s20, 4 }
  0xd4   : > { %402 = vsyncadd %s1879_s19, %s401_s24  ;;  %p1882_p9 = scmp.ne.s32.totalorder %s1103_s21, 0  ;;  %s1160_s22 = sshll.u32 %s1565_s27, 5 }
  0xd5   : > { %s405_s16 = scalar_lea.hbm %s2151_s5, %s1160_s22  ;;  %s2161_s9 = sshll.u32 %s2201_s13, 6 }
  0xd6   : > { %s408_s15 = sshll.u32 %s405_s16, 4  ;;  %s1891_s14 = sshll.u32 %s394_s18, 4  ;;  %s409_s15 = int_to_ptr.hbm [resolvable:$true] %s408_s15  ;;  %s411_s14 = int_to_ptr.vmem [resolvable:$true] %s1891_s14 }
  0xd7   : > { %s1429_s29 = sshra.s32 %s409_s15, 4  ;;  %s1431_s17 = sshrl.u32 %s2161_s9, 4  ;;  %s1430_s29 = int_to_ptr.hbm [resolvable:$true] %s1429_s29 }
  0xd8   : > { %s1436_s30 = scalar_lea.hbm %s1430_s29, %s1431_s17  ;;  %s1440_s24 = scalar_lea.hbm %s2151_s5, 108 }
  0xd9   : > { %p1437_p8 = scmp.ne.s32.totalorder %s1430_s29, %s1436_s30  ;;  %p1441_p12 = scmp.lt.s32.totalorder %s1430_s29, %s2151_s5 }
  0xda   : > { %p1442_p13 = scmp.lt.s32.totalorder %s1440_s24, %s1436_s30 }
  0xdb   : > { %p1438_p10 = pnand %p1437_p8, %p1882_p9 }
  0xdc   : > { %p1443_p0 = por %p1442_p13, %p1441_p12 }
  0xdd   : > { %p1439_p11 = pneg %p1438_p10 }
  0xdf   : > { %p1444_p1 = pnand %p1443_p0, %p1439_p11 }
  0xe1   : > { %1447 = shalt.err (!%p1444_p1)
}
  0xe2   : > { %s1448_s18 = sshra.s32 %s411_s14, 4  ;;  %s1584_s16 = smov [#allocation10]   ;;  %s1449_s18 = int_to_ptr.vmem [resolvable:$true] %s1448_s18 }
  0xe3   : > { %s1455_s8 = scalar_lea.vmem %s1449_s18, %s1431_s17  ;;  %s1459_s9 = scalar_lea.vmem %s1584_s16, 64 }
  0xe4   : > { %p1456_p2 = scmp.ne.s32.totalorder %s1449_s18, %s1455_s8  ;;  %p1461_p7 = scmp.lt.s32.totalorder %s1459_s9, %s1455_s8 }
  0xe6   : > { %p1457_p3 = pnand %p1456_p2, %p1882_p9 }
  0xe8   : > { %p1458_p5 = pneg %p1457_p3 }
  0xea   : > { %p1463_p8 = pnand %p1461_p7, %p1458_p5 }
  0xec   : > { %1466 = shalt.err (!%p1463_p8)
}
  0xed   : > { %s2177_s29 = sshll.u32 %s2201_s13, 6 }
  0xee   : > { %413 = dma.hbm_to_vmem [thread:$0]  (%p1882_p9), %s409_s15, %s2177_s29, %s411_s14, %s1879_s19  }
  0xef PF: > { %416 = sbr.rel (!%p1662_p4) target bundleno = 274 (0x112), region = 44  ;;  %s417_s17 = sand.u32 (%p1662_p4), 1, %s1565_s27  }
  0xf0   : > { %s419_s30 = sand.u32 (%p1662_p4), 1, %s1561_s26   ;;  %s1109_s20 = sshll.u32 (%p1662_p4), %s1565_s27, 3 }
  0xf1   : > { %s1108_s21 = sshll.u32 (%p1662_p4), %s419_s30, 5  ;;  %s423_s9 = ssub.s32 (%p1662_p4), 27, %s1109_s20 }
  0xf2   : > { %p424_p10 = scmp.lt.s32.totalorder (%p1662_p4), %s423_s9, 8  ;;  %s1919_s19 = scalar_lea.sflag (%p1662_p4), [#allocation11], %s417_s17 }
  0xf3   : > { %s421_s10 = scalar_lea.vmem (%p1662_p4), [#allocation12], %s1108_s21 }
  0xf4   : > { %s2203_s9 = smov (!%p424_p10, %s423_s9), 8 }
  0xf5   : > { %s1110_s12 = sshll.u32 %s2203_s9, 2 }
  0xf6   : > { %s427_s24 = ssub.s32 32, %s1110_s12 }
  0xf7   : > { %s428_s13 = sshll.u32 %s427_s24, 4 }
  0xf8   : > { %429 = vsyncadd %s1919_s19, %s428_s13  ;;  %p1922_p4 = scmp.ne.s32.totalorder %s1110_s12, 0  ;;  %s1161_s14 = sshll.u32 %s1565_s27, 5 }
  0xf9   : > { %s432_s18 = scalar_lea.hbm %s2152_s6, %s1161_s14  ;;  %s1114_s8 = sshll.u32 %s2203_s9, 6 }
  0xfa   : > { %s435_s16 = sshll.u32 %s432_s18, 4  ;;  %s1931_s29 = sshll.u32 %s421_s10, 4  ;;  %s436_s16 = int_to_ptr.hbm [resolvable:$true] %s435_s16  ;;  %s438_s29 = int_to_ptr.vmem [resolvable:$true] %s1931_s29 }
  0xfb   : > { %s1468_s17 = sshra.s32 %s436_s16, 4  ;;  %s1470_s30 = sshrl.u32 %s1114_s8, 4  ;;  %s1469_s17 = int_to_ptr.hbm [resolvable:$true] %s1468_s17 }
  0xfc   : > { %s1475_s21 = scalar_lea.hbm %s1469_s17, %s1470_s30  ;;  %s1479_s24 = scalar_lea.hbm %s2152_s6, 108 }
  0xfd   : > { %p1476_p9 = scmp.ne.s32.totalorder %s1469_s17, %s1475_s21  ;;  %p1480_p13 = scmp.lt.s32.totalorder %s1469_s17, %s2152_s6 }
  0xfe   : > { %p1481_p0 = scmp.lt.s32.totalorder %s1479_s24, %s1475_s21 }
  0xff   : > { %p1477_p11 = pnand %p1476_p9, %p1922_p4 }
 0x100   : > { %p1482_p1 = por %p1481_p0, %p1480_p13 }
 0x101   : > { %p1478_p12 = pneg %p1477_p11 }
 0x103   : > { %p1483_p2 = pnand %p1482_p1, %p1478_p12 }
 0x105   : > { %1486 = shalt.err (!%p1483_p2)
}
 0x106   : > { %s1487_s10 = sshra.s32 %s438_s29, 4  ;;  %s1585_s23 = smov [#allocation12]   ;;  %s1488_s10 = int_to_ptr.vmem [resolvable:$true] %s1487_s10 }
 0x107   : > { %s1494_s22 = scalar_lea.vmem %s1488_s10, %s1470_s30  ;;  %s1498_s18 = scalar_lea.vmem %s1585_s23, 64 }
 0x108   : > { %p1495_p3 = scmp.ne.s32.totalorder %s1488_s10, %s1494_s22  ;;  %p1500_p8 = scmp.lt.s32.totalorder %s1498_s18, %s1494_s22 }
 0x10a   : > { %p1496_p5 = pnand %p1495_p3, %p1922_p4 }
 0x10c   : > { %p1497_p7 = pneg %p1496_p5 }
 0x10e   : > { %p1502_p10 = pnand %p1500_p8, %p1497_p7 }
 0x110   : > { %1505 = shalt.err (!%p1502_p10)
}
 0x111   : > { %440 = dma.hbm_to_vmem [thread:$0]  (%p1922_p4), %s436_s16, %s1114_s8, %s438_s29, %s1919_s19  }
 0x112 PF: > { %p1115_p9 = scmp.ge.s32.totalorder %s1565_s27, 1  ;;  %p442_p11 = scmp.lt.s32.totalorder %s1565_s27, 5 }
 0x114   : > { %p443_p12 = pnand %p1115_p9, %p442_p11 }
 0x115   : > { %s448_s17 = sand.u32 (!%p443_p12), 1, %s1557_s25  }
 0x116   : > { %446 = sbr.rel (%p443_p12) target bundleno = 351 (0x15f), region = 48  ;;  %s1116_s30 = sshll.u32 (!%p443_p12), %s448_s17, 4 }
 0x117   : > { %s449_s21 = scalar_lea.sflag (!%p443_p12), [#allocation3], %s448_s17  ;;  %s1954_s20 = scalar_lea.vmem (!%p443_p12), [#allocation2], %s1116_s30 }
 0x11b   : > { %1536 = dma.done.wait (%p1667_p6), %s449_s21, 256  }
 0x11c   : > { %1538 = vsyncadd (%p1667_p6), %s449_s21, 4294967040  ;;  %s458_s9 = sand.u32 1, %s1647_s28   ;;  %s1961_s15 = scalar_lea.vmem [#allocation4], %s1116_s30 }
 0x11d   : > { %s459_s19 = scalar_lea.sflag [#allocation5], %s458_s9 }
 0x11e   : > { %1540 = dma.done.wait (%p1667_p6), %s459_s19, 768  }
 0x11f   : > { %1542 = vsyncadd (%p1667_p6), %s459_s19, 4294966528  ;;  %s1967_s27 = sshll.u32 %s448_s17, 5  ;;  %s479_s16 = scalar_lea.sflag [#allocation8], %s458_s9 }
 0x120   : > { %s472_s8 = scalar_lea.vmem [#allocation6], %s1967_s27  ;;  %s482_s29 = scalar_lea.vmem [#allocation7], %s1967_s27 }
 0x121   : > { %1544 = dma.done.wait (%p1667_p6), %s479_s16, 1024  }
 0x122   : > { %1546 = vsyncadd (%p1667_p6), %s479_s16, 4294966272  ;;  %s492_s12 = scalar_lea.vmem [#allocation9], %s1967_s27  ;;  %s499_s24 = scalar_lea.sflag [#allocation11], %s458_s9 }
 0x123   : > { %s502_s13 = scalar_lea.vmem [#allocation10], %s1967_s27 }
 0x124   : > { %1548 = dma.done.wait (%p1667_p6), %s499_s24, 1024  }
 0x125   : > { %1550 = vsyncadd (%p1667_p6), %s499_s24, 4294966272  ;;  %p609_p4 = scmp.lt.s32.totalorder %s1647_s28, 3  ;;  %v615_v0 = vlaneseq  ;;  %s1125_s14 = sshll.u32 %s1647_s28, 10  ;;  %v2002_v5 = vmov 0.0   ;;  %v2004_v6 = vmov 0.0  }
 0x126   : > { %s512_s17 = scalar_lea.vmem [#allocation12], %s1967_s27  ;;  %s2006_s30 = smov 0  }
 0x127   : > { %s610_s10 = scalar_select %p609_p4, %s1647_s28, 3  ;;  %v1985_v1 = vand.u32 127, %v615_v0 }
 0x129   : > { %s1162_s22 = sshll.u32 %s610_s10, 3  ;;  %v1988_v2 = vadd.s32 128, %v1985_v1  ;;  %v1991_v3 = vadd.s32 256, %v1985_v1  ;;  %v1994_v4 = vadd.s32 384, %v1985_v1 }
 0x12a   : > { %s1999_s18 = scalar_lea.vmem %s2153_s7, %s1162_s22 }
 0x12b LB: >> { %s1126_s21 = sshll.u32 %s1577_s30, 9  ;;  %vm667_vm0 = vcmask 1040384   ;;  %vm669_vm1 = vcmask 1042434   ;;  %v1586_v20 = vmov 0   ;;  %vm671_vm6 = vcmask 1041408   ;;  %s625_s30 = sadd.s32 1, %s1577_s30   ;;  %s1577_s30 = sphi %s2006_s30, %s625_s30   ;;  %v1573_v6 = vphi %v2004_v6, %v2184_v6   ;;  %v1569_v5 = vphi %v2002_v5, %v2183_v5  }
 0x12c   : >> { %s629_s9 = sshra.s32 %s1126_s21, 7  ;;  %s650_s19 = sadd.s32 %s1126_s21, %s1125_s14 }
 0x12d   : >> { %s1127_s16 = sshll.u32 %s629_s9, 1  ;;  %v651_v7 = vstv %s650_s19  ;;  %s2020_s24 = sshll.u32 %s629_s9, 2 }
 0x12e   : >> { %s632_s10 = scalar_lea.vmem %s1954_s20, %s1127_s16 [#allocation2]  ;;  %s637_s22 = scalar_lea.vmem %s1961_s15, %s1127_s16 [#allocation4]  ;;  %v652_v8 = vadd.s32 %v651_v7, %v1985_v1  ;;  %v653_v9 = vadd.s32 %v651_v7, %v1988_v2  ;;  %v654_v10 = vadd.s32 %v651_v7, %v1991_v3  ;;  %v655_v11 = vadd.s32 %v651_v7, %v1994_v4 }
 0x12f   : >> { %v633_v12 = vld [vmem:[%s632_s10] ss:$2 sm:$0xf]  ;;  %v1128_v13 = vld [vmem:[%s632_s10 + $0x1] ss:$2 sm:$0xf]  ;;  %s676_s11 = scalar_lea.vmem %s472_s8, %s2020_s24 [#allocation6]  ;;  %s685_s23 = scalar_lea.vmem %s482_s29, %s2020_s24 [#allocation7] }
 0x130   : >> { %v638_v14 = vld [vmem:[%s637_s22] ss:$2 sm:$0xf]  ;;  %v1130_v15 = vld [vmem:[%s637_s22 + $0x1] ss:$2 sm:$0xf]  ;;  %v641_v16 = vmul.f32 %v633_v12, %v633_v12  ;;  %v642_v17 = vmul.f32 %v1128_v13, %v1128_v13  ;;  %s694_s21 = scalar_lea.vmem %s492_s12, %s2020_s24 [#allocation9]  ;;  %s800_s9 = scalar_lea.vmem %s502_s13, %s2020_s24 [#allocation10] }
 0x131   : >> { %vm656_vm2 = vcmp.lt.s32.totalorder %v652_v8, 3333  ;;  %vm657_vm3 = vcmp.lt.s32.totalorder %v653_v9, 3333  ;;  %v2031_v18 = vld [vmem:[%s676_s11] ss:$4 sm:$0xf]  ;;  %v645_v19 = vmul.f32 %v638_v14, %v638_v14  ;;  %vm658_vm4 = vcmp.lt.s32.totalorder %v654_v10, 3333  ;;  %s812_s19 = scalar_lea.vmem %s512_s17, %s2020_s24 [#allocation12] }
 0x132   : >> { %vm659_vm5 = vcmp.lt.s32.totalorder %v655_v11, 3333  ;;  %v660_v21 = vsel %vm656_vm2, 1, %v1586_v20  ;;  %v2033_v22 = vld [vmem:[%s676_s11 + $0x1] ss:$4 sm:$0xf]  ;;  %v646_v23 = vmul.f32 %v1130_v15, %v1130_v15  ;;  %v661_v24 = vsel %vm657_vm3, 1, %v1586_v20 }
 0x133   : >> { %v662_v25 = vsel %vm658_vm4, 1, %v1586_v20  ;;  %v663_v26 = vsel %vm659_vm5, 1, %v1586_v20  ;;  %v2035_v27 = vld [vmem:[%s676_s11 + $0x2] ss:$4 sm:$0xf]  ;;  %v664_v28 = vrot.slane %v661_v24, 7  ;;  %v2051_v38 = vadd.f32 %v642_v17, %v641_v16 }
 0x134   : >> { %v665_v29 = vrot.slane %v662_v25, 6  ;;  %v666_v30 = vrot.slane %v663_v26, 5  ;;  %v2040_v31 = vld [vmem:[%s676_s11 + $0x3] ss:$4 sm:$0xf]  ;;  %v703_v32 = vmul.f32 %v2035_v27, %v2033_v22  ;;  %v2053_v39 = vadd.f32 %v646_v23, %v645_v19  ;;  %p622_p6 = scmp.ge.s32.totalorder %s625_s30, 2  }
 0x135   : >> { %v668_v33 = vsel %vm667_vm0, %v660_v21, %v664_v28  ;;  %v686_v35 = vld [vmem:[%s685_s23] ss:$4 sm:$0xf]  ;;  %v1136_v36 = vld [vmem:[%s685_s23 + $0x1] ss:$4 sm:$0xf]  ;;  %v702_v37 = vmul.f32 %v2040_v31, %v2031_v18 }
 0x136   : >> { %v670_v34 = vsel %vm669_vm1, %v665_v29, %v666_v30  ;;  %v2057_v41 = vld [vmem:[%s685_s23 + $0x2] ss:$4 sm:$0xf]  ;;  %v2059_v42 = vld [vmem:[%s685_s23 + $0x3] ss:$4 sm:$0xf]  ;;  %v775_v43 = vmul.f32 %v2040_v31, %v686_v35  ;;  %v776_v48 = vmul.f32 %v1136_v36, %v2035_v27  ;;  %v778_v26 = vmul.f32 %v1136_v36, %v2031_v18 }
 0x137   : >> { %v2055_v40 = vsel %vm671_vm6, %v668_v33, %v670_v34  ;;  %v695_v44 = vld [vmem:[%s694_s21] ss:$4 sm:$0xf]  ;;  %v2062_v45 = vsub.f32 %v702_v37, %v703_v32  ;;  %v705_v46 = vmul.f32 %v2059_v42, %v686_v35  ;;  %v706_v47 = vmul.f32 %v2057_v41, %v1136_v36  ;;  %v1140_v49 = vld [vmem:[%s694_s21 + $0x1] ss:$4 sm:$0xf] }
 0x138   : >> { %v1141_v50 = vld [vmem:[%s694_s21 + $0x2] ss:$4 sm:$0xf]  ;;  %v731_v51 = vmul.f32 %v2033_v22, %v695_v44  ;;  %v737_v52 = vmul.f32 %v2040_v31, %v695_v44  ;;  %v754_v53 = vmul.f32 %v1136_v36, %v695_v44  ;;  %v760_v54 = vmul.f32 %v2059_v42, %v695_v44  ;;  %v1142_v55 = vld [vmem:[%s694_s21 + $0x3] ss:$4 sm:$0xf] }
 0x139   : >> { %v707_v56 = vsub.f32 %v705_v46, %v706_v47  ;;  %v709_v57 = vmul.f32 %v1141_v50, %v1140_v49  ;;  %1228 = vrcp.f32 %v2062_v45  ;;  %v729_v58 = vmul.f32 %v1141_v50, %v2033_v22 }
 0x13a   : >> { %v708_v59 = vmul.f32 %v1142_v55, %v695_v44  ;;  %v728_v60 = vmul.f32 %v1142_v55, %v2031_v18  ;;  %v732_v61 = vmul.f32 %v1140_v49, %v2031_v18  ;;  %v734_v62 = vmul.f32 %v1142_v55, %v2035_v27 }
 0x13b   : >> { %1230 = vrcp.f32 %v707_v56  ;;  %v735_v63 = vmul.f32 %v1141_v50, %v2040_v31  ;;  %v738_v7 = vmul.f32 %v1140_v49, %v2035_v27  ;;  %v751_v8 = vmul.f32 %v1142_v55, %v686_v35 }
 0x13c   : >> { %v710_v9 = vsub.f32 %v708_v59, %v709_v57  ;;  %v730_v10 = vsub.f32 %v728_v60, %v729_v58  ;;  %v733_v11 = vsub.f32 %v731_v51, %v732_v61  ;;  %v752_v12 = vmul.f32 %v1141_v50, %v1136_v36 }
 0x13d   : >> { %vm644_vm7 = vcmp.le.f32.partialorder %v2051_v38, 1.0  ;;  %vm648_vm8 = vcmp.le.f32.partialorder %v2053_v39, 1.0  ;;  %v736_v13 = vsub.f32 %v734_v62, %v735_v63  ;;  %v739_v14 = vsub.f32 %v737_v52, %v738_v7  ;;  %v801_v63 = vld [vmem:[%s800_s9] ss:$4 sm:$0xf] }
 0x13e   : >> { %v755_v15 = vmul.f32 %v1140_v49, %v686_v35  ;;  %v757_v16 = vmul.f32 %v1142_v55, %v2057_v41  ;;  %1232 = vrcp.f32 %v710_v9  ;;  %v740_v17 = vmul.f32 %v730_v10, %v730_v10  ;;  %v1145_v10 = vld [vmem:[%s800_s9 + $0x1] ss:$4 sm:$0xf]  ;;  %vm2104_vm10 = vmand %vm644_vm7, %vm648_vm8 }
 0x13f   : >> { %v741_v19 = vmul.f32 %v733_v11, %v733_v11  ;;  %v753_v20 = vsub.f32 %v751_v8, %v752_v12  ;;  %v1229_v21 = vpop.eup %1228  ;;  %v743_v23 = vmul.f32 %v736_v13, %v736_v13  ;;  %v758_v25 = vmul.f32 %v1141_v50, %v2059_v42  ;;  %v1144_v8 = vld [vmem:[%s800_s9 + $0x3] ss:$4 sm:$0xf] }
 0x140   : >> { %v756_v24 = vsub.f32 %v754_v53, %v755_v15  ;;  %vm673_vm9 = vcmp.ne.s32.totalorder %v2055_v40, 0  ;;  %v712_v28 = vmul.f32 %v1229_v21, %v2062_v45  ;;  %v761_v30 = vmul.f32 %v1140_v49, %v2057_v41  ;;  %v1146_v15 = vld [vmem:[%s800_s9 + $0x2] ss:$4 sm:$0xf] }
 0x141   : >> { %v742_v29 = vadd.f32 %v741_v19, %v740_v17  ;;  %v763_v32 = vmul.f32 %v753_v20, %v753_v20  ;;  %v1231_v33 = vpop.eup %1230  ;;  %v745_v34 = vmul.f32 %v739_v14, %v739_v14  ;;  %v759_v37 = vsub.f32 %v757_v16, %v758_v25  ;;  %v1148_v17 = vld [vmem:[%s812_s19 + $0x3] ss:$4 sm:$0xf]  ;;  %v1150_v25 = vld [vmem:[%s812_s19 + $0x2] ss:$4 sm:$0xf]  ;;  %vm2113_vm11 = vmand %vm2104_vm10, %vm673_vm9 }
 0x142   : >> { %v764_v44 = vmul.f32 %v756_v24, %v756_v24  ;;  %v779_v46 = vmul.f32 %v2033_v22, %v686_v35  ;;  %v713_v47 = vsub.f32 2.0, %v712_v28  ;;  %v716_v50 = vmul.f32 %v1231_v33, %v707_v56  ;;  %v1149_v24 = vld [vmem:[%s812_s19 + $0x1] ss:$4 sm:$0xf] }
 0x143   : >> { %v744_v51 = vadd.f32 %v743_v23, %v742_v29  ;;  %v762_v52 = vsub.f32 %v760_v54, %v761_v30  ;;  %v766_v53 = vmul.f32 %v759_v37, %v759_v37  ;;  %v777_v55 = vsub.f32 %v775_v43, %v776_v48 }
 0x144   : >> { %v765_v36 = vadd.f32 %v764_v44, %v763_v32  ;;  %v781_v49 = vmul.f32 %v2057_v41, %v2040_v31  ;;  %v1233_v57 = vpop.eup %1232  ;;  %v714_v58 = vmul.f32 %v1229_v21, %v713_v47  ;;  %v717_v59 = vsub.f32 2.0, %v716_v50 }
 0x145   : >> { %v768_v60 = vmul.f32 %v762_v52, %v762_v52  ;;  %v780_v61 = vsub.f32 %v778_v26, %v779_v46  ;;  %v720_v35 = vmul.f32 %v1233_v57, %v710_v9  ;;  %v782_v54 = vmul.f32 %v2059_v42, %v2035_v27 }
 0x146   : >> { %v767_v62 = vadd.f32 %v766_v53, %v765_v36  ;;  %v784_v56 = vmul.f32 %v2059_v42, %v2031_v18  ;;  %v718_v43 = vmul.f32 %v1231_v33, %v717_v59  ;;  %v725_v48 = vmul.f32 %v714_v58, %v710_v9 }
 0x147   : >> { %v746_v7 = vadd.f32 %v745_v34, %v744_v51  ;;  %v785_v31 = vmul.f32 %v2057_v41, %v2033_v22  ;;  %v721_v11 = vsub.f32 2.0, %v720_v35  ;;  %v783_v13 = vsub.f32 %v781_v49, %v782_v54  ;;  %v813_v41 = vld [vmem:[%s812_s19] ss:$4 sm:$0xf] }
 0x148   : >> { %v769_v12 = vadd.f32 %v768_v60, %v767_v62  ;;  %v787_v14 = vmul.f32 %v777_v55, %v777_v55  ;;  %v726_v27 = vmul.f32 %v718_v43, %v710_v9  ;;  %v727_v42 = vmul.f32 %v718_v43, %v2062_v45 }
 0x149   : >> { %v748_v16 = vmul.f32 %v725_v48, %v725_v48  ;;  %v786_v22 = vsub.f32 %v784_v56, %v785_v31  ;;  %v722_v19 = vmul.f32 %v1233_v57, %v721_v11  ;;  %v788_v20 = vmul.f32 %v780_v61, %v780_v61 }
 0x14a   : >> { %v790_v21 = vmul.f32 %v783_v13, %v783_v13  ;;  %v804_v23 = vmul.f32 %v1144_v8, %v801_v63  ;;  %v771_v26 = vmul.f32 %v726_v27, %v726_v27  ;;  %v795_v28 = vmul.f32 %v727_v42, %v727_v42 }
 0x14b   : >> { %v749_v39 = vadd.f32 1.0, %v748_v16  ;;  %v792_v38 = vmul.f32 %v786_v22, %v786_v22  ;;  %v723_v9 = vmul.f32 %v722_v19, %v722_v19  ;;  %v789_v29 = vadd.f32 %v788_v20, %v787_v14 }
 0x14c   : >> { %v809_v30 = vmul.f32 %v1146_v15, %v1145_v10  ;;  %v816_v32 = vmul.f32 %v1148_v17, %v813_v41  ;;  %v724_v33 = vmul.f32 %v714_v58, %v714_v58  ;;  %v772_v34 = vadd.f32 1.0, %v771_v26 }
 0x14d   : >> { %v821_v37 = vmul.f32 %v1150_v25, %v1149_v24  ;;  %v747_v44 = vmul.f32 %v746_v7, %v723_v9  ;;  %v770_v46 = vmul.f32 %v769_v12, %v723_v9  ;;  %v791_v47 = vadd.f32 %v790_v21, %v789_v29 }
 0x14e   : >> { %v810_v50 = vsub.f32 %v804_v23, %v809_v30  ;;  %v796_v51 = vadd.f32 1.0, %v795_v28  ;;  %v1587_v40 = vmov 0.0   ;;  %vm837_vm12 = vcmp.lt.s32.totalorder (%p622_p6), %v615_v0, 512 }
 0x14f   : >> { %v822_v52 = vsub.f32 %v816_v32, %v821_v37  ;;  %v1151_v36 = vsel %vm2113_vm11, 1.0, %v1587_v40  ;;  %v750_v53 = vmul.f32 %v749_v39, %v747_v44  ;;  %v773_v55 = vmul.f32 %v772_v34, %v770_v46 }
 0x150   : >> { %v793_v49 = vadd.f32 %v792_v38, %v791_v47  ;;  %v823_v57 = vsub.f32 0.01, %v810_v50  ;;  %v834_v60 = vadd.f32 %v1569_v5, %v1151_v36  }
 0x151   : >> { %v825_v59 = vsub.f32 0.01, %v822_v52  ;;  %v774_v58 = vadd.f32 %v773_v55, %v750_v53 }
 0x152   : >> { %v794_v61 = vmul.f32 %v793_v49, %v724_v33  ;;  %v824_v35 = vmax.f32 %v823_v57, 0.0  ;;  %v2183_v5 = vmov %v834_v60  ;;  %1152 = vst.msk [vmem:[%s1999_s18 + $0x1] ss:$2 sm:$0xf] (%p622_p6), %vm837_vm12, %v834_v60 }
 0x153   : >> { %v826_v62 = vmax.f32 %v825_v59, 0.0 }
 0x154   : >> { %v797_v54 = vmul.f32 %v796_v51, %v794_v61 }
 0x155   : >> { %v827_v56 = vadd.f32 %v826_v62, %v824_v35 }
 0x156   : >> { %v798_v63 = vadd.f32 %v797_v54, %v774_v58 }
 0x157   : >> { %v828_v43 = vmul.f32 100.0, %v827_v56 }
 0x159   : >> { %v829_v48 = vadd.f32 %v828_v43, %v798_v63 }
 0x15a   : > { %624 = sbr.rel (!%p622_p6) target bundleno = 299 (0x12b), region = 192 }
 0x15b   : >> { %v830_v7 = vsel %vm2113_vm11, %v829_v48, 0.0 }
 0x15c   : >> { %v831_v31 = vadd.f32 %v1573_v6, %v830_v7  }
 0x15e   : >> { %v2184_v6 = vmov %v831_v31  ;;  %839 = vst.msk [vmem:[%s1999_s18] ss:$2 sm:$0xf] (%p622_p6), %vm837_vm12, %v831_v31 }
 0x15f PF: > { %s2185_s27 = sld [smem:[#allocation17_spill]]  ;;  %s2187_s24 = smov %s1557_s25 }
 0x160   : > { %s2186_s16 = sld [smem:[#allocation18_spill]]  ;;  %s2188_s25 = smov %s1561_s26 }
 0x165   : > { %p26_p13 = scmp.ge.s32.totalorder %s2185_s27, 6  }
 0x166   : > { %s2189_s26 = smov %s2186_s16 }
 0x167   :  { %28 = sbr.rel (!%p26_p13) target bundleno = 9 (0x9), region = 203 }
 0x16c   :  { %863 = vsyncpa [#allocation3], 1 }
 0x16d   :  { %865 = vsyncpa [#allocation3 + $0x1], 1 }
 0x16e   :  { %866 = vsyncpa [#allocation5], 1 }
 0x16f   :  { %868 = vsyncpa [#allocation5 + $0x1], 1 }
 0x170   :  { %869 = vsyncpa [#allocation8], 1 }
 0x171   :  { %871 = vsyncpa [#allocation8 + $0x1], 1 }
 0x172   :  { %872 = vsyncpa [#allocation11], 1 }
 0x173   :  { %874 = vsyncpa [#allocation11 + $0x1], 1 }

</bundles_post_ra>
